<compile_context>
chip_gen: v6e
topology: v6e:2x2x1
jax: 0.10.0
libtpu: 0.0.40
codegen_flags: <defaults>
</compile_context>

<pallas_src>
import functools

import jax
import jax.numpy as jnp
from jax.experimental import pallas as pl
from jax.experimental.pallas import tpu as pltpu


def _shift_zero(x, d, axis):
    """y[..., i, ...] = x[..., i + d, ...], zero-filled outside [0, n)."""
    if d == 0:
        return x
    n = x.shape[axis]
    rolled = pltpu.roll(x, shift=(-d) % n, axis=axis)
    idx = jax.lax.broadcasted_iota(jnp.int32, x.shape, axis)
    if d > 0:
        mask = idx < (n - d)
    else:
        mask = idx >= (-d)
    return jnp.where(mask, rolled, jnp.zeros_like(rolled))


def _conv1d_sep(x, taps, axis, pad):
    """1-D FIR along `axis` with zero padding: out[i] = sum_j taps[j]*x[i+j-pad]."""
    acc = None
    for j, w in enumerate(taps):
        term = w * _shift_zero(x, j - pad, axis)
        acc = term if acc is None else acc + term
    return acc


def _blur2d_kernel(x_ref, o_ref, *, taps, pad):
    # x_ref block: (ct, H, W)  -- W on lanes, H on sublanes.
    x = x_ref[...].astype(jnp.float32)
    t = _conv1d_sep(x, taps, axis=2, pad=pad)   # horizontal pass (lanes)
    y = _conv1d_sep(t, taps, axis=1, pad=pad)   # vertical pass (sublanes)
    o_ref[...] = y.astype(o_ref.dtype)


def blur2d(x, f=(1, 2, 1), normalize=True, flip=False, stride=1):
    """x: (N, C, H, W) -> depthwise blur, identical to the PyTorch Blur2d.forward."""
    if f is None:
        return x

    n, c, h, w = x.shape

    # Separable 1-D taps: outer(f, f)/sum == outer(f/sum(f), f/sum(f)).
    taps = [float(v) for v in f]
    if normalize:
        s = sum(taps)
        taps = [v / s for v in taps]
    if flip:
        taps = taps[::-1]
    taps = tuple(taps)
    k = len(taps)
    pad = (k - 1) // 2

    nc = n * c
    x_flat = x.reshape(nc, h, w)

    # Channel tiling: exact split (no halos). Keep one input block <= ~2 MiB so
    # in+out double buffering plus f32 temps fits comfortably in scoped VMEM on
    # all generations (incl. v7x's 64 MiB physical VMEM).
    bytes_per_map = h * w * x.dtype.itemsize
    ct_cap = max(1, (2 * 1024 * 1024) // bytes_per_map)
    ct = 1
    for d in range(min(ct_cap, nc), 0, -1):
        if nc % d == 0:
            ct = d
            break
    grid = (nc // ct,)

    cost = pl.CostEstimate(
        flops=4 * k * nc * h * w,                       # two separable passes
        transcendentals=0,
        bytes_accessed=2 * x.size * x.dtype.itemsize,   # read x + write out
    )

    out = pl.pallas_call(
        functools.partial(_blur2d_kernel, taps=taps, pad=pad),
        out_shape=jax.ShapeDtypeStruct((nc, h, w), x.dtype),
        grid_spec=pltpu.PrefetchScalarGridSpec(
            num_scalar_prefetch=0,
            grid=grid,
            in_specs=[pl.BlockSpec((ct, h, w), lambda i: (i, 0, 0))],
            out_specs=pl.BlockSpec((ct, h, w), lambda i: (i, 0, 0)),
        ),
        compiler_params=pltpu.CompilerParams(
            dimension_semantics=("parallel",),
            vmem_limit_bytes=48 * 1024 * 1024,
        ),
        cost_estimate=cost,
    )(x_flat)

    out = out.reshape(n, c, h, w)
    if stride != 1:
        # conv2d with padding=(k-1)//2, stride s == stride-1 output subsampled.
        out = out[:, :, ::stride, ::stride]
    return out


def blur2d_ref(x, f=(1, 2, 1), normalize=True, flip=False, stride=1):
    """Pure-JAX reference mirroring F.conv2d(..., groups=C)."""
    if f is None:
        return x
    f1 = jnp.asarray(f, dtype=jnp.float32)
    k2 = f1[:, None] * f1[None, :]
    if normalize:
        k2 = k2 / jnp.sum(k2)
    if flip:
        k2 = k2[::-1, ::-1]
    c = x.shape[1]
    kh, kw = k2.shape
    kernel = jnp.broadcast_to(k2[None, None], (c, 1, kh, kw))
    pad = int((kh - 1) // 2)
    out = jax.lax.conv_general_dilated(
        x.astype(jnp.float32),
        kernel,
        window_strides=(stride, stride),
        padding=((pad, pad), (pad, pad)),
        dimension_numbers=("NCHW", "OIHW", "NCHW"),
        feature_group_count=c,
    )
    return out.astype(x.dtype)


if __name__ == "__main__":
    key = jax.random.PRNGKey(0)
    x = jax.random.normal(key, (2, 4, 16, 16), dtype=jnp.float32)

    # Default Blur2d: f=[1,2,1], normalize=True, flip=False, stride=1.
    y = blur2d(x)
    jax.block_until_ready(y)
    y_ref = blur2d_ref(x)
    assert y.shape == x.shape and y.dtype == x.dtype
    assert jnp.allclose(y, y_ref, atol=1e-5, rtol=1e-5)

    # Strided variant (exercises the wrapper subsampling path).
    y2 = blur2d(x, stride=2)
    jax.block_until_ready(y2)
    y2_ref = blur2d_ref(x, stride=2)
    assert y2.shape == y2_ref.shape
    assert jnp.allclose(y2, y2_ref, atol=1e-5, rtol=1e-5)

    print("KERNEL_OK")
</pallas_src>

<mosaic_0001>
module attributes {stable_mosaic.version = 11 : i64} {
  func.func @_blur2d_kernel(%arg0: i32, %arg1: memref<8x16x16xf32, #tpu.memory_space<vmem>>, %arg2: memref<8x16x16xf32, #tpu.memory_space<vmem>>) attributes {dimension_semantics = [#tpu.dimension_semantics<parallel>], iteration_bounds = array<i64: 1>, scalar_prefetch = 0 : i64, scratch_operands = 0 : i64, tpu.core_type = #tpu.core_type<tc>, window_params = [{transform_indices = @transform_0, window_bounds = array<i64: 8, 16, 16>}, {transform_indices = @transform_1, window_bounds = array<i64: 8, 16, 16>}]} {
    %c0 = arith.constant 0 : index
    %c0_0 = arith.constant 0 : index
    %c0_1 = arith.constant 0 : index
    %0 = vector.load %arg1[%c0, %c0_0, %c0_1] : memref<8x16x16xf32, #tpu.memory_space<vmem>>, vector<8x16x16xf32>
    %c1_i32 = arith.constant 1 : i32
    %1 = tpu.dynamic_rotate %0 by %c1_i32 dim 2 : vector<8x16x16xf32>, i32 -> vector<8x16x16xf32>
    %2 = tpu.iota {dimensions = array<i32: 2>} : vector<8x16x16xi32>
    %c1_i32_2 = arith.constant 1 : i32
    %3 = vector.broadcast %c1_i32_2 : i32 to vector<8x16x16xi32>
    %4 = arith.cmpi sge, %2, %3 : vector<8x16x16xi32>
    %cst = arith.constant 0.000000e+00 : f32
    %5 = vector.broadcast %cst : f32 to vector<8x16x16xf32>
    %6 = arith.select %4, %1, %5 : vector<8x16x16xi1>, vector<8x16x16xf32>
    %cst_3 = arith.constant 2.500000e-01 : f32
    %7 = vector.broadcast %cst_3 : f32 to vector<8x16x16xf32>
    %8 = arith.mulf %7, %6 : vector<8x16x16xf32>
    %cst_4 = arith.constant 5.000000e-01 : f32
    %9 = vector.broadcast %cst_4 : f32 to vector<8x16x16xf32>
    %10 = arith.mulf %9, %0 : vector<8x16x16xf32>
    %11 = arith.addf %8, %10 : vector<8x16x16xf32>
    %c15_i32 = arith.constant 15 : i32
    %12 = tpu.dynamic_rotate %0 by %c15_i32 dim 2 : vector<8x16x16xf32>, i32 -> vector<8x16x16xf32>
    %13 = tpu.iota {dimensions = array<i32: 2>} : vector<8x16x16xi32>
    %c15_i32_5 = arith.constant 15 : i32
    %14 = vector.broadcast %c15_i32_5 : i32 to vector<8x16x16xi32>
    %15 = arith.cmpi slt, %13, %14 : vector<8x16x16xi32>
    %cst_6 = arith.constant 0.000000e+00 : f32
    %16 = vector.broadcast %cst_6 : f32 to vector<8x16x16xf32>
    %17 = arith.select %15, %12, %16 : vector<8x16x16xi1>, vector<8x16x16xf32>
    %cst_7 = arith.constant 2.500000e-01 : f32
    %18 = vector.broadcast %cst_7 : f32 to vector<8x16x16xf32>
    %19 = arith.mulf %18, %17 : vector<8x16x16xf32>
    %20 = arith.addf %11, %19 : vector<8x16x16xf32>
    %c1_i32_8 = arith.constant 1 : i32
    %21 = tpu.dynamic_rotate %20 by %c1_i32_8 dim 1 : vector<8x16x16xf32>, i32 -> vector<8x16x16xf32>
    %22 = tpu.iota {dimensions = array<i32: 1>} : vector<8x16x16xi32>
    %c1_i32_9 = arith.constant 1 : i32
    %23 = vector.broadcast %c1_i32_9 : i32 to vector<8x16x16xi32>
    %24 = arith.cmpi sge, %22, %23 : vector<8x16x16xi32>
    %cst_10 = arith.constant 0.000000e+00 : f32
    %25 = vector.broadcast %cst_10 : f32 to vector<8x16x16xf32>
    %26 = arith.select %24, %21, %25 : vector<8x16x16xi1>, vector<8x16x16xf32>
    %cst_11 = arith.constant 2.500000e-01 : f32
    %27 = vector.broadcast %cst_11 : f32 to vector<8x16x16xf32>
    %28 = arith.mulf %27, %26 : vector<8x16x16xf32>
    %cst_12 = arith.constant 5.000000e-01 : f32
    %29 = vector.broadcast %cst_12 : f32 to vector<8x16x16xf32>
    %30 = arith.mulf %29, %20 : vector<8x16x16xf32>
    %31 = arith.addf %28, %30 : vector<8x16x16xf32>
    %c15_i32_13 = arith.constant 15 : i32
    %32 = tpu.dynamic_rotate %20 by %c15_i32_13 dim 1 : vector<8x16x16xf32>, i32 -> vector<8x16x16xf32>
    %33 = tpu.iota {dimensions = array<i32: 1>} : vector<8x16x16xi32>
    %c15_i32_14 = arith.constant 15 : i32
    %34 = vector.broadcast %c15_i32_14 : i32 to vector<8x16x16xi32>
    %35 = arith.cmpi slt, %33, %34 : vector<8x16x16xi32>
    %cst_15 = arith.constant 0.000000e+00 : f32
    %36 = vector.broadcast %cst_15 : f32 to vector<8x16x16xf32>
    %37 = arith.select %35, %32, %36 : vector<8x16x16xi1>, vector<8x16x16xf32>
    %cst_16 = arith.constant 2.500000e-01 : f32
    %38 = vector.broadcast %cst_16 : f32 to vector<8x16x16xf32>
    %39 = arith.mulf %38, %37 : vector<8x16x16xf32>
    %40 = arith.addf %31, %39 : vector<8x16x16xf32>
    %c0_17 = arith.constant 0 : index
    %c0_18 = arith.constant 0 : index
    %c0_19 = arith.constant 0 : index
    %41 = vector.load %arg2[%c0_17, %c0_18, %c0_19] : memref<8x16x16xf32, #tpu.memory_space<vmem>>, vector<8x16x16xf32>
    tpu.vector_store %arg2[%c0_17, %c0_18, %c0_19], %40 {strides = array<i32>} : memref<8x16x16xf32, #tpu.memory_space<vmem>>, vector<8x16x16xf32>,
    return
  }
  func.func @transform_0(%arg0: i32) -> (i32, i32, i32) {
    %c0_i32 = arith.constant 0 : i32
    %c0_i32_0 = arith.constant 0 : i32
    %c0_i32_1 = arith.constant 0 : i32
    return %arg0, %c0_i32, %c0_i32_0 : i32, i32, i32
  }
  func.func @transform_1(%arg0: i32) -> (i32, i32, i32) {
    %c0_i32 = arith.constant 0 : i32
    %c0_i32_0 = arith.constant 0 : i32
    %c0_i32_1 = arith.constant 0 : i32
    return %arg0, %c0_i32, %c0_i32_0 : i32, i32, i32
  }
}

</mosaic_0001>

<bundles_post_ra>
// kernel: tpu_custom_call.1
= control target key start
LH: loop header
LB: loop body
LE: loop exit
PB: predicated region body
PF: predicated region fallthrough
CT: control target
= control target key end

     0   :  { %6 = vsyncpa [#allocation3], 0  ;;  %s1076_s0 = inlined_call_operand.hbm [shape: f32[8,16,16], index: 0, kind: input, shape index: {}]   ;;  %s1077_s1 = inlined_call_operand.hbm [shape: f32[8,16,16], index: 1, kind: output, shape index: {}]  }
   0x1   :  { %7 = vsyncpa [#allocation4], 0  ;;  %s634_s6 = smov [#allocation2]  }
   0x2   :  { %s13_s7 = sshll.u32 %s634_s6, 4  ;;  %s14_s7 = int_to_ptr.vmem [resolvable:$true] %s13_s7 }
   0x3   :  { %s598_s8 = scalar_lea.vmem %s14_s7, 2048  ;;  %p603_p1 = scmp.lt.s32.totalorder %s14_s7, %s14_s7 }
   0x4   :  { %p599_p0 = scmp.ne.s32.totalorder %s14_s7, %s598_s8  ;;  %p604_p2 = scmp.lt.s32.totalorder %s598_s8, %s598_s8 }
   0x6   :  { %p605_p3 = por %p604_p2, %p603_p1 }
   0x8   :  { %p606_p4 = pnand %p605_p3, %p599_p0 }
   0xa   :  { %609 = shalt.err (!%p606_p4)
}
   0xb   :  { %s635_s9 = smov 128   ;;  %s636_s10 = smov 8  }
   0xc   :  { %19 = dma.hbm_to_vmem [thread:$0]  %s1076_s0, 2048, %s14_s7, [#allocation3], %s635_s9, %s635_s9, %s636_s10  }
   0xd   :  { %630 = dma.done.wait [#allocation3], 2048  }
   0xe   :  { %631 = vsyncadd [#allocation3], 4294965248  ;;  %v657_v0 = vld [vmem:[#allocation2] sm:$0xff]  ;;  %v659_v1 = vld [vmem:[#allocation2 + $0x10] sm:$0xff]  ;;  %s637_s13 = smov 16   ;;  %vm39_vm0 = vcmask 1047680  }
   0xf   :  { %40 = vrot.lane.b32.xlu0 %v657_v0, %s637_s13  ;;  %46 = vrot.lane.b32.xlu1 %v659_v1, %s637_s13  ;;  %v665_v2 = vld [vmem:[#allocation2 + $0x8] sm:$0xff]  ;;  %v667_v3 = vld [vmem:[#allocation2 + $0x18] sm:$0xff]  ;;  %v673_v4 = vld [vmem:[#allocation2 + $0x20] sm:$0xff]  ;;  %s638_s0 = smov 113   ;;  %s639_s14 = smov 127   ;;  %vm549_vm7 = vcmask 130048  }
  0x10   :  { %v675_v5 = vld [vmem:[#allocation2 + $0x28] sm:$0xff]  ;;  %v681_v6 = vld [vmem:[#allocation2 + $0x30] sm:$0xff]  ;;  %v683_v7 = vld [vmem:[#allocation2 + $0x38] sm:$0xff]  ;;  %s640_s15 = smov [#allocation5]  }
  0x11   :  { %v689_v8 = vld [vmem:[#allocation2 + $0x40] sm:$0xff]  ;;  %v691_v9 = vld [vmem:[#allocation2 + $0x48] sm:$0xff]  ;;  %v697_v10 = vld [vmem:[#allocation2 + $0x50] sm:$0xff]  ;;  %s571_s16 = sshll.u32 %s640_s15, 4  ;;  %s572_s16 = int_to_ptr.vmem [resolvable:$true] %s571_s16 }
  0x12   :  { %v699_v11 = vld [vmem:[#allocation2 + $0x58] sm:$0xff]  ;;  %v705_v12 = vld [vmem:[#allocation2 + $0x60] sm:$0xff]  ;;  %v707_v13 = vld [vmem:[#allocation2 + $0x68] sm:$0xff]  ;;  %s610_s17 = scalar_lea.vmem %s572_s16, 2048  ;;  %p615_p6 = scmp.lt.s32.totalorder %s572_s16, %s572_s16 }
  0x13   :  { %43 = vrot.lane.b32.xlu0 %v665_v2, %s637_s13  ;;  %49 = vrot.lane.b32.xlu1 %v667_v3, %s637_s13  ;;  %v713_v14 = vld [vmem:[#allocation2 + $0x70] sm:$0xff]  ;;  %v715_v15 = vld [vmem:[#allocation2 + $0x78] sm:$0xff]  ;;  %p611_p5 = scmp.ne.s32.totalorder %s572_s16, %s610_s17  ;;  %p616_p7 = scmp.lt.s32.totalorder %s610_s17, %s610_s17 }
  0x15   :  { %p617_p8 = por %p616_p7, %p615_p6 }
  0x17   :  { %52 = vrot.lane.b32.xlu0 %v673_v4, %s637_s13  ;;  %55 = vrot.lane.b32.xlu1 %v675_v5, %s637_s13  ;;  %p618_p9 = pnand %p617_p8, %p611_p5 }
  0x1b   :  { %58 = vrot.lane.b32.xlu0 %v681_v6, %s637_s13  ;;  %61 = vrot.lane.b32.xlu1 %v683_v7, %s637_s13 }
  0x1f   :  { %64 = vrot.lane.b32.xlu0 %v689_v8, %s637_s13  ;;  %67 = vrot.lane.b32.xlu1 %v691_v9, %s637_s13 }
  0x23   :  { %70 = vrot.lane.b32.xlu0 %v697_v10, %s637_s13  ;;  %73 = vrot.lane.b32.xlu1 %v699_v11, %s637_s13 }
  0x27   :  { %76 = vrot.lane.b32.xlu0 %v705_v12, %s637_s13  ;;  %79 = vrot.lane.b32.xlu1 %v707_v13, %s637_s13 }
  0x2b   :  { %82 = vrot.lane.b32.xlu0 %v713_v14, %s637_s13  ;;  %85 = vrot.lane.b32.xlu1 %v715_v15, %s637_s13 }
  0x81   :  { %v41_v16 = vpop.permute.xlu0 %40  ;;  %v47_v17 = vpop.permute.xlu1 %46 }
  0x82   :  { %v42_v18 = vsel %vm39_vm0, %v41_v16, %v657_v0  ;;  %v48_v19 = vsel %vm39_vm0, %v47_v17, %v659_v1 }
  0x83   :  { %88 = vrot.lane.b32.xlu0 %v42_v18, %s637_s13 }
  0x85   :  { %v44_v20 = vpop.permute.xlu0 %43  ;;  %v50_v21 = vpop.permute.xlu1 %49 }
  0x86   :  { %v45_v22 = vsel %vm39_vm0, %v44_v20, %v665_v2  ;;  %v51_v23 = vsel %vm39_vm0, %v50_v21, %v667_v3 }
  0x87   :  { %92 = vrot.lane.b32.xlu0 %v48_v19, %s637_s13  ;;  %90 = vrot.lane.b32.xlu1 %v45_v22, %s637_s13 }
  0x89   :  { %v53_v24 = vpop.permute.xlu0 %52  ;;  %v56_v25 = vpop.permute.xlu1 %55 }
  0x8a   :  { %v54_v26 = vsel %vm39_vm0, %v53_v24, %v673_v4  ;;  %v57_v27 = vsel %vm39_vm0, %v56_v25, %v675_v5 }
  0x8b   :  { %94 = vrot.lane.b32.xlu1 %v51_v23, %s637_s13  ;;  %96 = vrot.lane.b32.xlu0 %v54_v26, %s637_s13 }
  0x8d   :  { %v59_v28 = vpop.permute.xlu0 %58  ;;  %v62_v29 = vpop.permute.xlu1 %61 }
  0x8e   :  { %v60_v30 = vsel %vm39_vm0, %v59_v28, %v681_v6  ;;  %v63_v31 = vsel %vm39_vm0, %v62_v29, %v683_v7 }
  0x8f   :  { %98 = vrot.lane.b32.xlu1 %v57_v27, %s637_s13  ;;  %100 = vrot.lane.b32.xlu0 %v60_v30, %s637_s13 }
  0x91   :  { %v65_v32 = vpop.permute.xlu0 %64  ;;  %v68_v33 = vpop.permute.xlu1 %67 }
  0x92   :  { %v66_v34 = vsel %vm39_vm0, %v65_v32, %v689_v8  ;;  %v69_v35 = vsel %vm39_vm0, %v68_v33, %v691_v9 }
  0x93   :  { %102 = vrot.lane.b32.xlu1 %v63_v31, %s637_s13  ;;  %104 = vrot.lane.b32.xlu0 %v66_v34, %s637_s13 }
  0x95   :  { %v71_v36 = vpop.permute.xlu0 %70  ;;  %v74_v37 = vpop.permute.xlu1 %73 }
  0x96   :  { %v72_v38 = vsel %vm39_vm0, %v71_v36, %v697_v10  ;;  %v75_v39 = vsel %vm39_vm0, %v74_v37, %v699_v11  ;;  %v136_v37 = vlaneseq }
  0x97   :  { %106 = vrot.lane.b32.xlu1 %v69_v35, %s637_s13  ;;  %108 = vrot.lane.b32.xlu0 %v72_v38, %s637_s13 }
  0x99   :  { %v77_v40 = vpop.permute.xlu0 %76  ;;  %v80_v41 = vpop.permute.xlu1 %79 }
  0x9a   :  { %v78_v42 = vsel %vm39_vm0, %v77_v40, %v705_v12  ;;  %v81_v43 = vsel %vm39_vm0, %v80_v41, %v707_v13  ;;  %v817_v40 = vand.u32 127, %v136_v37 }
  0x9b   :  { %110 = vrot.lane.b32.xlu1 %v75_v39, %s637_s13  ;;  %112 = vrot.lane.b32.xlu0 %v78_v42, %s637_s13 }
  0x9c   :  { %vm138_vm1 = vcmp.ge.s32.totalorder %v817_v40, 1  ;;  %vm267_vm2 = vcmp.lt.s32.totalorder %v817_v40, 15 }
  0x9d   :  { %v83_v44 = vpop.permute.xlu0 %82  ;;  %v86_v45 = vpop.permute.xlu1 %85 }
  0x9e   :  { %v84_v46 = vsel %vm39_vm0, %v83_v44, %v713_v14  ;;  %v87_v47 = vsel %vm39_vm0, %v86_v45, %v715_v15  ;;  %v235_v45 = vmul.f32 0.5, %v657_v0 }
  0x9f   :  { %114 = vrot.lane.b32.xlu1 %v81_v43, %s637_s13  ;;  %116 = vrot.lane.b32.xlu0 %v84_v46, %s637_s13 }
  0xa3   :  { %118 = vrot.lane.b32.xlu1 %v87_v47, %s637_s13  ;;  %v236_v47 = vmul.f32 0.5, %v665_v2 }
  0xf5   :  { %v89_v48 = vpop.permute.xlu0 %88 }
  0xf6   :  { %v120_v49 = vsel %vm39_vm0, %v89_v48, %v657_v0 }
  0xf7   :  { %155 = vrot.lane.b32.xlu0 %v120_v49, %s638_s0 }
  0xf9   :  { %v91_v50 = vpop.permute.xlu1 %90  ;;  %v93_v51 = vpop.permute.xlu0 %92 }
  0xfa   :  { %v121_v52 = vsel %vm39_vm0, %v91_v50, %v665_v2  ;;  %v122_v53 = vsel %vm39_vm0, %v93_v51, %v659_v1  ;;  %v238_v50 = vmul.f32 0.5, %v667_v3  ;;  %v239_v51 = vmul.f32 0.5, %v673_v4 }
  0xfb   :  { %157 = vrot.lane.b32.xlu1 %v121_v52, %s638_s0  ;;  %159 = vrot.lane.b32.xlu0 %v122_v53, %s638_s0  ;;  %v244_v2 = vmul.f32 0.5, %v691_v9 }
  0xfd   :  { %v95_v54 = vpop.permute.xlu1 %94  ;;  %v97_v55 = vpop.permute.xlu0 %96 }
  0xfe   :  { %v123_v56 = vsel %vm39_vm0, %v95_v54, %v667_v3  ;;  %v124_v57 = vsel %vm39_vm0, %v97_v55, %v673_v4  ;;  %v242_v55 = vmul.f32 0.5, %v683_v7 }
  0xff   :  { %161 = vrot.lane.b32.xlu1 %v123_v56, %s638_s0  ;;  %163 = vrot.lane.b32.xlu0 %v124_v57, %s638_s0 }
 0x101   :  { %v99_v58 = vpop.permute.xlu1 %98  ;;  %v101_v59 = vpop.permute.xlu0 %100 }
 0x102   :  { %v125_v60 = vsel %vm39_vm0, %v99_v58, %v675_v5  ;;  %v126_v61 = vsel %vm39_vm0, %v101_v59, %v681_v6  ;;  %v248_v59 = vmul.f32 0.5, %v707_v13 }
 0x103   :  { %165 = vrot.lane.b32.xlu1 %v125_v60, %s638_s0  ;;  %167 = vrot.lane.b32.xlu0 %v126_v61, %s638_s0 }
 0x105   :  { %v103_v62 = vpop.permute.xlu1 %102  ;;  %v105_v63 = vpop.permute.xlu0 %104 }
 0x106   :  { %v127_v16 = vsel %vm39_vm0, %v103_v62, %v683_v7  ;;  %v128_v17 = vsel %vm39_vm0, %v105_v63, %v689_v8  ;;  %v246_v7 = vmul.f32 0.5, %v699_v11  ;;  %v852_v63 = vmul.f32 0.5, %v715_v15 }
 0x107   :  { %169 = vrot.lane.b32.xlu1 %v127_v16, %s638_s0  ;;  %171 = vrot.lane.b32.xlu0 %v128_v17, %s638_s0 }
 0x109   :  { %v107_v18 = vpop.permute.xlu1 %106  ;;  %v109_v19 = vpop.permute.xlu0 %108 }
 0x10a   :  { %v129_v20 = vsel %vm39_vm0, %v107_v18, %v691_v9  ;;  %v130_v21 = vsel %vm39_vm0, %v109_v19, %v697_v10 }
 0x10b   :  { %173 = vrot.lane.b32.xlu1 %v129_v20, %s638_s0  ;;  %175 = vrot.lane.b32.xlu0 %v130_v21, %s638_s0 }
 0x10d   :  { %v111_v22 = vpop.permute.xlu1 %110  ;;  %v113_v23 = vpop.permute.xlu0 %112 }
 0x10e   :  { %v131_v24 = vsel %vm39_vm0, %v111_v22, %v699_v11  ;;  %v132_v25 = vsel %vm39_vm0, %v113_v23, %v705_v12 }
 0x10f   :  { %177 = vrot.lane.b32.xlu1 %v131_v24, %s638_s0  ;;  %179 = vrot.lane.b32.xlu0 %v132_v25, %s638_s0 }
 0x111   :  { %v115_v26 = vpop.permute.xlu1 %114  ;;  %v117_v27 = vpop.permute.xlu0 %116 }
 0x112   :  { %v133_v28 = vsel %vm39_vm0, %v115_v26, %v707_v13  ;;  %v134_v29 = vsel %vm39_vm0, %v117_v27, %v713_v14 }
 0x113   :  { %181 = vrot.lane.b32.xlu1 %v133_v28, %s638_s0  ;;  %183 = vrot.lane.b32.xlu0 %v134_v29, %s638_s0 }
 0x115   :  { %v119_v30 = vpop.permute.xlu1 %118 }
 0x116   :  { %v135_v31 = vsel %vm39_vm0, %v119_v30, %v715_v15 }
 0x117   :  { %185 = vrot.lane.b32.xlu1 %v135_v31, %s638_s0  ;;  %268 = vrot.lane.b32.xlu0 %v120_v49, %s639_s14  ;;  %v237_v49 = vmul.f32 0.5, %v659_v1 }
 0x11b   :  { %270 = vrot.lane.b32.xlu1 %v121_v52, %s639_s14  ;;  %272 = vrot.lane.b32.xlu0 %v122_v53, %s639_s14  ;;  %v240_v52 = vmul.f32 0.5, %v675_v5  ;;  %v241_v53 = vmul.f32 0.5, %v681_v6  ;;  %v245_v6 = vmul.f32 0.5, %v697_v10 }
 0x11f   :  { %274 = vrot.lane.b32.xlu1 %v123_v56, %s639_s14  ;;  %276 = vrot.lane.b32.xlu0 %v124_v57, %s639_s14  ;;  %v243_v56 = vmul.f32 0.5, %v689_v8  ;;  %v834_v57 = vshrl.u32 %v136_v37, 7  ;;  %v247_v8 = vmul.f32 0.5, %v705_v12 }
 0x121   :  { %v858_v13 = vadd.s32 8, %v834_v57  ;;  %vm382_vm3 = vcmp.lt.s32.totalorder %v834_v57, 1  ;;  %vm482_vm4 = vcmp.lt.s32.totalorder %v834_v57, 7  ;;  %vm400_vm5 = vcmp.ge.s32.totalorder %v834_v57, 1 }
 0x123   :  { %278 = vrot.lane.b32.xlu1 %v125_v60, %s639_s14  ;;  %280 = vrot.lane.b32.xlu0 %v126_v61, %s639_s14  ;;  %v849_v61 = vmul.f32 0.5, %v713_v14  ;;  %vm500_vm6 = vcmp.lt.s32.totalorder %v858_v13, 15 }
 0x127   :  { %282 = vrot.lane.b32.xlu1 %v127_v16, %s639_s14  ;;  %284 = vrot.lane.b32.xlu0 %v128_v17, %s639_s14 }
 0x12b   :  { %286 = vrot.lane.b32.xlu1 %v129_v20, %s639_s14  ;;  %288 = vrot.lane.b32.xlu0 %v130_v21, %s639_s14 }
 0x12f   :  { %290 = vrot.lane.b32.xlu1 %v131_v24, %s639_s14  ;;  %292 = vrot.lane.b32.xlu0 %v132_v25, %s639_s14 }
 0x133   :  { %294 = vrot.lane.b32.xlu1 %v133_v28, %s639_s14  ;;  %296 = vrot.lane.b32.xlu0 %v134_v29, %s639_s14 }
 0x137   :  { %298 = vrot.lane.b32.xlu1 %v135_v31, %s639_s14 }
 0x169   :  { %v156_v32 = vpop.permute.xlu0 %155 }
 0x16a   :  { %v203_v46 = vsel %vm138_vm1, %v156_v32, 0.0 }
 0x16b   :  { %v219_v58 = vmul.f32 0.25, %v203_v46 }
 0x16d   :  { %v158_v33 = vpop.permute.xlu1 %157  ;;  %v160_v34 = vpop.permute.xlu0 %159  ;;  %v251_v11 = vadd.f32 %v235_v45, %v219_v58 }
 0x16e   :  { %v204_v48 = vsel %vm138_vm1, %v158_v33, 0.0  ;;  %v205_v3 = vsel %vm138_vm1, %v160_v34, 0.0 }
 0x16f   :  { %v220_v1 = vmul.f32 0.25, %v204_v48  ;;  %v221_v16 = vmul.f32 0.25, %v205_v3 }
 0x171   :  { %v162_v35 = vpop.permute.xlu1 %161  ;;  %v164_v36 = vpop.permute.xlu0 %163  ;;  %v252_v12 = vadd.f32 %v236_v47, %v220_v1  ;;  %v253_v27 = vadd.f32 %v237_v49, %v221_v16 }
 0x172   :  { %v206_v4 = vsel %vm138_vm1, %v162_v35, 0.0  ;;  %v207_v5 = vsel %vm138_vm1, %v164_v36, 0.0 }
 0x173   :  { %v222_v17 = vmul.f32 0.25, %v206_v4  ;;  %v223_v18 = vmul.f32 0.25, %v207_v5 }
 0x175   :  { %v166_v38 = vpop.permute.xlu1 %165  ;;  %v168_v39 = vpop.permute.xlu0 %167  ;;  %v872_v28 = vadd.f32 %v238_v50, %v222_v17  ;;  %v255_v35 = vadd.f32 %v239_v51, %v223_v18 }
 0x176   :  { %v208_v9 = vsel %vm138_vm1, %v166_v38, 0.0  ;;  %v209_v10 = vsel %vm138_vm1, %v168_v39, 0.0 }
 0x177   :  { %v224_v19 = vmul.f32 0.25, %v208_v9  ;;  %v225_v21 = vmul.f32 0.25, %v209_v10 }
 0x179   :  { %v170_v41 = vpop.permute.xlu1 %169  ;;  %v172_v42 = vpop.permute.xlu0 %171  ;;  %v882_v39 = vadd.f32 %v240_v52, %v224_v19 }
 0x17a   :  { %v210_v14 = vsel %vm138_vm1, %v170_v41, 0.0  ;;  %v211_v15 = vsel %vm138_vm1, %v172_v42, 0.0  ;;  %v884_v41 = vadd.f32 %v241_v53, %v225_v21 }
 0x17b   :  { %v226_v31 = vmul.f32 0.25, %v210_v14  ;;  %v227_v32 = vmul.f32 0.25, %v211_v15 }
 0x17d   :  { %v174_v43 = vpop.permute.xlu1 %173  ;;  %v176_v44 = vpop.permute.xlu0 %175  ;;  %v894_v50 = vadd.f32 %v242_v55, %v226_v31  ;;  %v896_v51 = vadd.f32 %v243_v56, %v227_v32 }
 0x17e   :  { %v212_v20 = vsel %vm138_vm1, %v174_v43, 0.0  ;;  %v213_v22 = vsel %vm138_vm1, %v176_v44, 0.0 }
 0x17f   :  { %v228_v33 = vmul.f32 0.25, %v212_v20  ;;  %v229_v36 = vmul.f32 0.25, %v213_v22 }
 0x181   :  { %v178_v54 = vpop.permute.xlu1 %177  ;;  %v180_v0 = vpop.permute.xlu0 %179  ;;  %v898_v52 = vadd.f32 %v244_v2, %v228_v33 }
 0x182   :  { %v214_v23 = vsel %vm138_vm1, %v178_v54, 0.0  ;;  %v215_v24 = vsel %vm138_vm1, %v180_v0, 0.0  ;;  %v900_v54 = vadd.f32 %v245_v6, %v229_v36 }
 0x183   :  { %v230_v37 = vmul.f32 0.25, %v214_v23  ;;  %v231_v38 = vmul.f32 0.25, %v215_v24 }
 0x185   :  { %v182_v60 = vpop.permute.xlu1 %181  ;;  %v184_v62 = vpop.permute.xlu0 %183  ;;  %v902_v0 = vadd.f32 %v246_v7, %v230_v37  ;;  %v904_v58 = vadd.f32 %v247_v8, %v231_v38 }
 0x186   :  { %v216_v29 = vsel %vm138_vm1, %v182_v60, 0.0  ;;  %v217_v43 = vsel %vm138_vm1, %v184_v62, 0.0 }
 0x187   :  { %v232_v42 = vmul.f32 0.25, %v216_v29  ;;  %v908_v4 = vmul.f32 0.25, %v217_v43 }
 0x189   :  { %v186_v25 = vpop.permute.xlu1 %185  ;;  %v269_v26 = vpop.permute.xlu0 %268  ;;  %v906_v3 = vadd.f32 %v248_v59, %v232_v42 }
 0x18a   :  { %v316_v30 = vsel %vm267_vm2, %v269_v26, 0.0  ;;  %v218_v46 = vsel %vm138_vm1, %v186_v25, 0.0 }
 0x18b   :  { %v332_v34 = vmul.f32 0.25, %v316_v30  ;;  %v910_v5 = vmul.f32 0.25, %v218_v46 }
 0x18d   :  { %v271_v44 = vpop.permute.xlu1 %270  ;;  %v273_v45 = vpop.permute.xlu0 %272  ;;  %v348_v47 = vadd.f32 %v332_v34, %v251_v11 }
 0x18e   :  { %v317_v48 = vsel %vm267_vm2, %v271_v44, 0.0  ;;  %v318_v49 = vsel %vm267_vm2, %v273_v45, 0.0 }
 0x18f   :  { %v333_v53 = vmul.f32 0.25, %v317_v48  ;;  %v334_v1 = vmul.f32 0.25, %v318_v49  ;;  %v364_v2 = vrot.slane %v348_v47, 7  ;;  %v466_v8 = vrot.slane %v348_v47, 1 }
 0x190   :  { %v434_v17 = vmul.f32 0.5, %v348_v47 }
 0x191   :  { %v349_v55 = vadd.f32 %v333_v53, %v252_v12  ;;  %v275_v56 = vpop.permute.xlu1 %274  ;;  %v277_v9 = vpop.permute.xlu0 %276  ;;  %v350_v60 = vadd.f32 %v334_v1, %v253_v27 }
 0x192   :  { %v319_v6 = vsel %vm267_vm2, %v275_v56, 0.0  ;;  %v320_v7 = vsel %vm267_vm2, %v277_v9, 0.0 }
 0x193   :  { %v372_v62 = vrot.slane %v349_v55, 7  ;;  %v474_v59 = vrot.slane %v349_v55, 1  ;;  %v335_v16 = vmul.f32 0.25, %v319_v6  ;;  %v435_v10 = vmul.f32 0.5, %v349_v55 }
 0x194   :  { %v365_v11 = vrot.slane %v350_v60, 7  ;;  %v336_v18 = vmul.f32 0.25, %v320_v7  ;;  %v436_v25 = vmul.f32 0.5, %v350_v60  ;;  %v467_v33 = vrot.slane %v350_v60, 1 }
 0x195   :  { %v383_v12 = vsel %vm382_vm3, %v364_v2, %v372_v62  ;;  %v391_v19 = vsel %vm382_vm3, %v372_v62, %v364_v2  ;;  %v483_v14 = vsel %vm482_vm4, %v466_v8, %v474_v59  ;;  %v491_v15 = vsel %vm482_vm4, %v474_v59, %v466_v8  ;;  %v279_v20 = vpop.permute.xlu1 %278  ;;  %v281_v21 = vpop.permute.xlu0 %280 }
 0x196   :  { %v402_v22 = vsel %vm400_vm5, %v391_v19, 0.0  ;;  %v419_v23 = vmul.f32 0.25, %v383_v12  ;;  %v502_v24 = vsel %vm500_vm6, %v491_v15, 0.0  ;;  %v351_v29 = vadd.f32 %v335_v16, %v872_v28 }
 0x197   :  { %v418_v26 = vmul.f32 0.25, %v402_v22  ;;  %v518_v27 = vmul.f32 0.25, %v502_v24  ;;  %v352_v30 = vadd.f32 %v336_v18, %v255_v35  ;;  %v517_v32 = vmul.f32 0.25, %v483_v14 }
 0x198   :  { %v451_v31 = vadd.f32 %v435_v10, %v419_v23  ;;  %v321_v34 = vsel %vm267_vm2, %v279_v20, 0.0  ;;  %v373_v37 = vrot.slane %v351_v29, 7  ;;  %v475_v38 = vrot.slane %v351_v29, 1 }
 0x199   :  { %v450_v36 = vadd.f32 %v434_v17, %v418_v26  ;;  %v322_v42 = vsel %vm267_vm2, %v281_v21, 0.0  ;;  %v283_v43 = vpop.permute.xlu1 %282  ;;  %v285_v44 = vpop.permute.xlu0 %284  ;;  %v437_v46 = vmul.f32 0.5, %v351_v29  ;;  %v366_v47 = vrot.slane %v352_v30, 7 }
 0x19a   :  { %v534_v45 = vadd.f32 %v518_v27, %v451_v31  ;;  %v438_v48 = vmul.f32 0.5, %v352_v30  ;;  %v384_v35 = vsel %vm382_vm3, %v365_v11, %v373_v37  ;;  %v392_v49 = vsel %vm382_vm3, %v373_v37, %v365_v11 }
 0x19b   :  { %v533_v28 = vadd.f32 %v517_v32, %v450_v36  ;;  %v484_v53 = vsel %vm482_vm4, %v467_v33, %v475_v38  ;;  %v404_v1 = vsel %vm400_vm5, %v392_v49, 0.0  ;;  %v421_v55 = vmul.f32 0.25, %v384_v35 }
 0x19c   :  { %551 = vst.msk [vmem:[#allocation5 + $0x8] sm:$0xff] %vm549_vm7, %v534_v45  ;;  %v492_v56 = vsel %vm482_vm4, %v475_v38, %v467_v33  ;;  %v519_v9 = vmul.f32 0.25, %v484_v53  ;;  %v420_v2 = vmul.f32 0.25, %v404_v1  ;;  %v337_v6 = vmul.f32 0.25, %v321_v34 }
 0x19d   :  { %550 = vst.msk [vmem:[#allocation5] sm:$0xff] %vm549_vm7, %v533_v28  ;;  %v504_v60 = vsel %vm500_vm6, %v492_v56, 0.0  ;;  %v338_v7 = vmul.f32 0.25, %v322_v42  ;;  %v287_v8 = vpop.permute.xlu1 %286  ;;  %v453_v62 = vadd.f32 %v437_v46, %v421_v55  ;;  %v323_v16 = vsel %vm267_vm2, %v283_v43, 0.0  ;;  %v289_v10 = vpop.permute.xlu0 %288 }
 0x19e   :  { %v520_v59 = vmul.f32 0.25, %v504_v60  ;;  %v324_v17 = vsel %vm267_vm2, %v285_v44, 0.0  ;;  %v452_v11 = vadd.f32 %v436_v25, %v420_v2  ;;  %v353_v18 = vadd.f32 %v337_v6, %v882_v39 }
 0x19f   :  { %v354_v12 = vadd.f32 %v338_v7, %v884_v41  ;;  %v339_v19 = vmul.f32 0.25, %v323_v16  ;;  %v468_v15 = vrot.slane %v352_v30, 1  ;;  %v340_v20 = vmul.f32 0.25, %v324_v17 }
 0x1a0   :  { %v536_v14 = vadd.f32 %v520_v59, %v453_v62  ;;  %v325_v21 = vsel %vm267_vm2, %v287_v8, 0.0  ;;  %v535_v22 = vadd.f32 %v519_v9, %v452_v11  ;;  %v374_v23 = vrot.slane %v353_v18, 7 }
 0x1a1   :  { %v476_v24 = vrot.slane %v353_v18, 1  ;;  %v326_v26 = vsel %vm267_vm2, %v289_v10, 0.0  ;;  %v439_v25 = vmul.f32 0.5, %v353_v18  ;;  %v367_v27 = vrot.slane %v354_v12, 7  ;;  %v291_v44 = vpop.permute.xlu1 %290  ;;  %v293_v7 = vpop.permute.xlu0 %292 }
 0x1a2   :  { %553 = vst.msk [vmem:[#allocation5 + $0x18] sm:$0xff] %vm549_vm7, %v536_v14  ;;  %v440_v39 = vmul.f32 0.5, %v354_v12  ;;  %v355_v41 = vadd.f32 %v339_v19, %v894_v50  ;;  %552 = vst.msk [vmem:[#allocation5 + $0x10] sm:$0xff] %vm549_vm7, %v535_v22  ;;  %v385_v29 = vsel %vm382_vm3, %v366_v47, %v374_v23  ;;  %v393_v30 = vsel %vm382_vm3, %v374_v23, %v366_v47 }
 0x1a3   :  { %v485_v31 = vsel %vm482_vm4, %v468_v15, %v476_v24  ;;  %v493_v32 = vsel %vm482_vm4, %v476_v24, %v468_v15  ;;  %v406_v33 = vsel %vm400_vm5, %v393_v30, 0.0  ;;  %v423_v34 = vmul.f32 0.25, %v385_v29 }
 0x1a4   :  { %v506_v50 = vsel %vm500_vm6, %v493_v32, 0.0  ;;  %v469_v36 = vrot.slane %v354_v12, 1  ;;  %v422_v37 = vmul.f32 0.25, %v406_v33  ;;  %v521_v38 = vmul.f32 0.25, %v485_v31 }
 0x1a5   :  { %v522_v42 = vmul.f32 0.25, %v506_v50  ;;  %v375_v43 = vrot.slane %v355_v41, 7  ;;  %v455_v45 = vadd.f32 %v439_v25, %v423_v34  ;;  %v441_v46 = vmul.f32 0.5, %v355_v41  ;;  %v295_v12 = vpop.permute.xlu1 %294 }
 0x1a6   :  { %v477_v47 = vrot.slane %v355_v41, 1  ;;  %v356_v28 = vadd.f32 %v340_v20, %v896_v51  ;;  %v454_v35 = vadd.f32 %v438_v48, %v422_v37  ;;  %v341_v1 = vmul.f32 0.25, %v325_v21 }
 0x1a7   :  { %v386_v49 = vsel %vm382_vm3, %v367_v27, %v375_v43  ;;  %v394_v53 = vsel %vm382_vm3, %v375_v43, %v367_v27  ;;  %v538_v55 = vadd.f32 %v522_v42, %v455_v45  ;;  %v342_v48 = vmul.f32 0.25, %v326_v26 }
 0x1a8   :  { %v408_v56 = vsel %vm400_vm5, %v394_v53, 0.0  ;;  %v425_v9 = vmul.f32 0.25, %v386_v49  ;;  %v486_v2 = vsel %vm482_vm4, %v469_v36, %v477_v47  ;;  %v537_v60 = vadd.f32 %v521_v38, %v454_v35  ;;  %v297_v35 = vpop.permute.xlu0 %296 }
 0x1a9   :  { %v424_v6 = vmul.f32 0.25, %v408_v56  ;;  %v494_v51 = vsel %vm482_vm4, %v477_v47, %v469_v36  ;;  %v985_v8 = vadd.f32 %v849_v61, %v908_v4  ;;  %v989_v62 = vadd.f32 %v852_v63, %v910_v5  ;;  %555 = vst.msk [vmem:[#allocation5 + $0x28] sm:$0xff] %vm549_vm7, %v538_v55  ;;  %v299_v55 = vpop.permute.xlu1 %298 }
 0x1aa   :  { %v457_v59 = vadd.f32 %v441_v46, %v425_v9  ;;  %v508_v16 = vsel %vm500_vm6, %v494_v51, 0.0  ;;  %554 = vst.msk [vmem:[#allocation5 + $0x20] sm:$0xff] %vm549_vm7, %v537_v60  ;;  %v523_v10 = vmul.f32 0.25, %v486_v2  ;;  %v357_v18 = vadd.f32 %v341_v1, %v898_v52 }
 0x1ab   :  { %v456_v17 = vadd.f32 %v440_v39, %v424_v6  ;;  %v524_v11 = vmul.f32 0.25, %v508_v16  ;;  %v368_v61 = vrot.slane %v356_v28, 7  ;;  %v442_v4 = vmul.f32 0.5, %v356_v28 }
 0x1ac   :  { %v327_v63 = vsel %vm267_vm2, %v291_v44, 0.0  ;;  %v328_v5 = vsel %vm267_vm2, %v293_v7, 0.0  ;;  %v376_v15 = vrot.slane %v357_v18, 7  ;;  %v358_v20 = vadd.f32 %v342_v48, %v900_v54 }
 0x1ad   :  { %v539_v19 = vadd.f32 %v523_v10, %v456_v17  ;;  %v540_v14 = vadd.f32 %v524_v11, %v457_v59  ;;  %v470_v21 = vrot.slane %v356_v28, 1  ;;  %v443_v22 = vmul.f32 0.5, %v357_v18 }
 0x1ae   :  { %v478_v23 = vrot.slane %v357_v18, 1  ;;  %v329_v52 = vsel %vm267_vm2, %v295_v12, 0.0  ;;  %v387_v24 = vsel %vm382_vm3, %v368_v61, %v376_v15  ;;  %v395_v26 = vsel %vm382_vm3, %v376_v15, %v368_v61 }
 0x1af   :  { %556 = vst.msk [vmem:[#allocation5 + $0x30] sm:$0xff] %vm549_vm7, %v539_v19  ;;  %557 = vst.msk [vmem:[#allocation5 + $0x38] sm:$0xff] %vm549_vm7, %v540_v14  ;;  %v343_v25 = vmul.f32 0.25, %v327_v63  ;;  %v344_v27 = vmul.f32 0.25, %v328_v5  ;;  %v410_v54 = vsel %vm400_vm5, %v395_v26, 0.0  ;;  %v427_v39 = vmul.f32 0.25, %v387_v24 }
 0x1b0   :  { %v487_v41 = vsel %vm482_vm4, %v470_v21, %v478_v23  ;;  %v495_v29 = vsel %vm482_vm4, %v478_v23, %v470_v21  ;;  %v426_v30 = vmul.f32 0.25, %v410_v54  ;;  %v369_v32 = vrot.slane %v358_v20, 7 }
 0x1b1   :  { %v510_v31 = vsel %vm500_vm6, %v495_v29, 0.0  ;;  %v359_v33 = vadd.f32 %v343_v25, %v902_v0  ;;  %v459_v34 = vadd.f32 %v443_v22, %v427_v39  ;;  %v525_v50 = vmul.f32 0.25, %v487_v41 }
 0x1b2   :  { %v526_v36 = vmul.f32 0.25, %v510_v31  ;;  %v360_v37 = vadd.f32 %v344_v27, %v904_v58  ;;  %v458_v38 = vadd.f32 %v442_v4, %v426_v30  ;;  %v345_v44 = vmul.f32 0.25, %v329_v52 }
 0x1b3   :  { %v377_v42 = vrot.slane %v359_v33, 7  ;;  %v479_v43 = vrot.slane %v359_v33, 1  ;;  %v444_v46 = vmul.f32 0.5, %v358_v20  ;;  %v471_v47 = vrot.slane %v358_v20, 1 }
 0x1b4   :  { %v542_v45 = vadd.f32 %v526_v36, %v459_v34  ;;  %v445_v28 = vmul.f32 0.5, %v359_v33  ;;  %v541_v49 = vadd.f32 %v525_v50, %v458_v38  ;;  %v370_v1 = vrot.slane %v360_v37, 7 }
 0x1b5   :  { %v388_v53 = vsel %vm382_vm3, %v369_v32, %v377_v42  ;;  %v396_v0 = vsel %vm382_vm3, %v377_v42, %v369_v32  ;;  %v488_v9 = vsel %vm482_vm4, %v471_v47, %v479_v43  ;;  %v496_v2 = vsel %vm482_vm4, %v479_v43, %v471_v47 }
 0x1b6   :  { %559 = vst.msk [vmem:[#allocation5 + $0x48] sm:$0xff] %vm549_vm7, %v542_v45  ;;  %v412_v58 = vsel %vm400_vm5, %v396_v0, 0.0  ;;  %v429_v56 = vmul.f32 0.25, %v388_v53  ;;  %558 = vst.msk [vmem:[#allocation5 + $0x40] sm:$0xff] %vm549_vm7, %v541_v49  ;;  %v512_v6 = vsel %vm500_vm6, %v496_v2, 0.0  ;;  %v361_v51 = vadd.f32 %v345_v44, %v906_v3 }
 0x1b7   :  { %v428_v60 = vmul.f32 0.25, %v412_v58  ;;  %v330_v48 = vsel %vm267_vm2, %v297_v35, 0.0  ;;  %v528_v59 = vmul.f32 0.25, %v512_v6  ;;  %v331_v17 = vsel %vm267_vm2, %v299_v55, 0.0 }
 0x1b8   :  { %v461_v7 = vadd.f32 %v445_v28, %v429_v56  ;;  %v346_v16 = vmul.f32 0.25, %v330_v48  ;;  %v527_v11 = vmul.f32 0.25, %v488_v9  ;;  %v378_v18 = vrot.slane %v361_v51, 7 }
 0x1b9   :  { %v460_v10 = vadd.f32 %v444_v46, %v428_v60  ;;  %v480_v12 = vrot.slane %v361_v51, 1  ;;  %v472_v4 = vrot.slane %v360_v37, 1  ;;  %v447_v63 = vmul.f32 0.5, %v361_v51 }
 0x1ba   :  { %v544_v61 = vadd.f32 %v528_v59, %v461_v7  ;;  %v347_v5 = vmul.f32 0.25, %v331_v17  ;;  %v389_v3 = vsel %vm382_vm3, %v370_v1, %v378_v18  ;;  %v397_v14 = vsel %vm382_vm3, %v378_v18, %v370_v1 }
 0x1bb   :  { %v543_v19 = vadd.f32 %v527_v11, %v460_v10  ;;  %v362_v15 = vadd.f32 %v346_v16, %v985_v8  ;;  %v414_v40 = vsel %vm400_vm5, %v397_v14, 0.0  ;;  %v431_v20 = vmul.f32 0.25, %v389_v3 }
 0x1bc   :  { %561 = vst.msk [vmem:[#allocation5 + $0x58] sm:$0xff] %vm549_vm7, %v544_v61  ;;  %v489_v21 = vsel %vm482_vm4, %v472_v4, %v480_v12  ;;  %v497_v22 = vsel %vm482_vm4, %v480_v12, %v472_v4  ;;  %v446_v23 = vmul.f32 0.5, %v360_v37  ;;  %v430_v52 = vmul.f32 0.25, %v414_v40 }
 0x1bd   :  { %560 = vst.msk [vmem:[#allocation5 + $0x50] sm:$0xff] %vm549_vm7, %v543_v19  ;;  %v514_v24 = vsel %vm500_vm6, %v497_v22, 0.0  ;;  %v463_v8 = vadd.f32 %v447_v63, %v431_v20  ;;  %v363_v25 = vadd.f32 %v347_v5, %v989_v62  ;;  %v529_v54 = vmul.f32 0.25, %v489_v21 }
 0x1be   :  { %v530_v26 = vmul.f32 0.25, %v514_v24  ;;  %v462_v27 = vadd.f32 %v446_v23, %v430_v52  ;;  %v371_v39 = vrot.slane %v362_v15, 7  ;;  %v473_v29 = vrot.slane %v362_v15, 1 }
 0x1bf   :  { %v379_v30 = vrot.slane %v363_v25, 7  ;;  %v481_v31 = vrot.slane %v363_v25, 1  ;;  %v449_v50 = vmul.f32 0.5, %v363_v25  ;;  %v448_v43 = vmul.f32 0.5, %v362_v15 }
 0x1c0   :  { %v546_v41 = vadd.f32 %v530_v26, %v463_v8  ;;  %v545_v32 = vadd.f32 %v529_v54, %v462_v27 }
 0x1c1   :  { %v390_v33 = vsel %vm382_vm3, %v371_v39, %v379_v30  ;;  %v398_v34 = vsel %vm382_vm3, %v379_v30, %v371_v39  ;;  %v498_v62 = vsel %vm482_vm4, %v481_v31, %v473_v29  ;;  %v490_v38 = vsel %vm482_vm4, %v473_v29, %v481_v31 }
 0x1c2   :  { %563 = vst.msk [vmem:[#allocation5 + $0x68] sm:$0xff] %vm549_vm7, %v546_v41  ;;  %562 = vst.msk [vmem:[#allocation5 + $0x60] sm:$0xff] %vm549_vm7, %v545_v32  ;;  %v416_v36 = vsel %vm400_vm5, %v398_v34, 0.0  ;;  %v433_v37 = vmul.f32 0.25, %v390_v33  ;;  %v516_v42 = vsel %vm500_vm6, %v498_v62, 0.0  ;;  %v531_v28 = vmul.f32 0.25, %v490_v38 }
 0x1c3   :  { %v432_v44 = vmul.f32 0.25, %v416_v36  ;;  %v532_v45 = vmul.f32 0.25, %v516_v42 }
 0x1c4   :  { %v465_v46 = vadd.f32 %v449_v50, %v433_v37 }
 0x1c5   :  { %v464_v47 = vadd.f32 %v448_v43, %v432_v44 }
 0x1c6   :  { %v548_v35 = vadd.f32 %v532_v45, %v465_v46 }
 0x1c7   :  { %v547_v49 = vadd.f32 %v531_v28, %v464_v47 }
 0x1c8   :  { %565 = vst.msk [vmem:[#allocation5 + $0x78] sm:$0xff] %vm549_vm7, %v548_v35 }
 0x1c9   :  { %564 = vst.msk [vmem:[#allocation5 + $0x70] sm:$0xff] %vm549_vm7, %v547_v49 }
 0x1ca   :  { %621 = shalt.err (!%p618_p9)
}
 0x1cb   :  { %577 = dma.vmem_to_hbm [thread:$0]  %s572_s16, 2048, %s1077_s1, [#allocation4], %s635_s9, %s635_s9, %s636_s10  }
 0x1cc   :  { %632 = dma.done.wait [#allocation4], 2048  }
 0x1cd   :  { %633 = vsyncadd [#allocation4], 4294965248 }
 0x1ce   :  { %581 = vsyncpa [#allocation3], 1 }
 0x1cf   :  { %582 = vsyncpa [#allocation4], 1 }

</bundles_post_ra>
